<compile_context>
chip_gen: v5e
topology: v5e:2x2
jax: 0.10.0
libtpu: 0.0.40
codegen_flags: <defaults>
</compile_context>

<pallas_src>
import functools

import jax
import jax.numpy as jnp
from jax.experimental import pallas as pl
from jax.experimental.pallas import tpu as pltpu


def _cdiv(a, b):
    return -(-a // b)


# ---------------------------------------------------------------------------
# Kernels
# ---------------------------------------------------------------------------

def _direct_kernel(x_ref, o_ref, *, inv_h):
    # x_ref: (TB, TS, H)   o_ref: (TB, 2, TS)
    x = x_ref[...]
    o_ref[:, 0, :] = jnp.max(x, axis=-1).astype(o_ref.dtype)
    o_ref[:, 1, :] = (jnp.sum(x, axis=-1, dtype=jnp.float32) * inv_h).astype(o_ref.dtype)


def _direct_masked_kernel(x_ref, m_ref, o_ref, *, inv_h):
    # x_ref: (TB, TS, H)   m_ref: (TB, 1, H)   o_ref: (TB, 2, TS)
    xm = x_ref[...] * m_ref[...]          # native dtype; exact for 0/1 masks
    o_ref[:, 0, :] = jnp.max(xm, axis=-1).astype(o_ref.dtype)
    o_ref[:, 1, :] = (jnp.sum(xm, axis=-1, dtype=jnp.float32) * inv_h).astype(o_ref.dtype)


def _acc_kernel(x_ref, o_ref, max_acc, sum_acc, *, inv_h):
    # Reduction over hidden_dim split across grid axis 2 ('arbitrary').
    h = pl.program_id(2)

    @pl.when(h == 0)
    def _():
        max_acc[...] = jnp.full(max_acc.shape, -jnp.inf, max_acc.dtype)
        sum_acc[...] = jnp.zeros(sum_acc.shape, sum_acc.dtype)

    x = x_ref[...]
    max_acc[...] = jnp.maximum(max_acc[...], jnp.max(x, axis=-1).astype(jnp.float32))
    sum_acc[...] = sum_acc[...] + jnp.sum(x, axis=-1, dtype=jnp.float32)

    @pl.when(h == pl.num_programs(2) - 1)
    def _():
        o_ref[:, 0, :] = max_acc[...].astype(o_ref.dtype)
        o_ref[:, 1, :] = (sum_acc[...] * inv_h).astype(o_ref.dtype)


def _acc_masked_kernel(x_ref, m_ref, o_ref, max_acc, sum_acc, *, inv_h):
    h = pl.program_id(2)

    @pl.when(h == 0)
    def _():
        max_acc[...] = jnp.full(max_acc.shape, -jnp.inf, max_acc.dtype)
        sum_acc[...] = jnp.zeros(sum_acc.shape, sum_acc.dtype)

    xm = x_ref[...] * m_ref[...]
    max_acc[...] = jnp.maximum(max_acc[...], jnp.max(xm, axis=-1).astype(jnp.float32))
    sum_acc[...] = sum_acc[...] + jnp.sum(xm, axis=-1, dtype=jnp.float32)

    @pl.when(h == pl.num_programs(2) - 1)
    def _():
        o_ref[:, 0, :] = max_acc[...].astype(o_ref.dtype)
        o_ref[:, 1, :] = (sum_acc[...] * inv_h).astype(o_ref.dtype)


# ---------------------------------------------------------------------------
# Tile selection (generation- and grid-aware)
# ---------------------------------------------------------------------------

def _physical_vmem_bytes():
    try:
        info = pltpu.get_tpu_info()
        v = int(getattr(info, "vmem_capacity_bytes", 0))
        if v > 0:
            return v
    except Exception:
        pass
    return 64 * 1024 * 1024   # conservative default (v7x per-TC VMEM)


def _choose_tiles(B, S, H, itemsize, budget_bytes, min_steps=4):
    """Pick (tb, ts, th) so one input tile stays within budget_bytes while
    keeping several parallel grid steps and legal (8,128) block shapes."""
    min_ts = S if S < 128 else 128

    # 1) hidden tile (reduction axis). Prefer full H (single pass, no scratch).
    #    If H must be tiled, th is a multiple of 128 that DIVIDES H so edge
    #    padding never enters the max/sum reduction.
    if min_ts * H * itemsize <= budget_bytes or H % 128 != 0:
        th = H
    else:
        th = max(128, (budget_bytes // (min_ts * itemsize)) // 128 * 128)
        th = min(th, H)
        while H % th != 0:
            th -= 128

    # 2) seq tile: full S if it fits, else a multiple of 128.
    max_ts = max(1, budget_bytes // (th * itemsize))
    if S <= max_ts:
        ts = S
    else:
        ts = min(S, max(128, (max_ts // 128) * 128))

    # 3) batch tile: fill the remaining budget (tb is unconstrained by layout).
    tb = max(1, budget_bytes // (ts * th * itemsize))
    tb = min(tb, B)

    # 4) guarantee enough parallel grid steps (software pipelining + balanced
    #    2-TC sharding on v7x) instead of one giant tile.
    ns = _cdiv(S, ts)
    if ns < min_steps:
        want_nb = min(B, _cdiv(min_steps, ns))
        if want_nb > 1:
            tb = min(tb, _cdiv(B, want_nb))
    nb = _cdiv(B, tb)
    if nb > 1 and nb % 2 == 1 and nb < B:   # best-effort even split over 2 TCs
        tb = _cdiv(B, nb + 1)

    return int(tb), int(ts), int(th)


# ---------------------------------------------------------------------------
# Wrapper
# ---------------------------------------------------------------------------

def avg_max_pooler(tensor, masks=None, *, _tiles=None):
    """tensor: (B, S, H) float; masks: optional (B, H). Returns (B, 2*S)."""
    B, S, H = tensor.shape
    dtype = tensor.dtype
    itemsize = jnp.dtype(dtype).itemsize
    inv_h = 1.0 / float(H)   # torch divides by the FULL hidden_dim, even masked

    physical_vmem = _physical_vmem_bytes()
    budget = min(32 << 20, physical_vmem // 4)   # 16 MiB on v7x, 32 MiB on v5e/v6e
    if _tiles is not None:
        tb, ts, th = _tiles                      # internal/testing override
    else:
        tb, ts, th = _choose_tiles(B, S, H, itemsize, budget)
    assert th == H or H % th == 0, "hidden tile must divide hidden_dim"

    grid = (_cdiv(B, tb), _cdiv(S, ts), _cdiv(H, th))
    tiled_h = grid[2] > 1
    masked = masks is not None

    in_specs = [pl.BlockSpec((tb, ts, th), lambda b, s, h: (b, s, h))]
    operands = [tensor]
    if masked:
        # (B, H) -> (B, 1, H): keeps tb out of the block's last two dims.
        # TODO(synk): non-binary float32 masks are downcast when tensor is
        # bf16; exact for the usual 0/1 masks.
        operands.append(masks.astype(dtype).reshape(B, 1, H))
        in_specs.append(pl.BlockSpec((tb, 1, th), lambda b, s, h: (b, 0, h)))

    out_spec = pl.BlockSpec((tb, 2, ts), lambda b, s, h: (b, 0, s))

    if tiled_h:
        kernel = _acc_masked_kernel if masked else _acc_kernel
        scratch = [pltpu.VMEM((tb, ts), jnp.float32),
                   pltpu.VMEM((tb, ts), jnp.float32)]
    else:
        kernel = _direct_masked_kernel if masked else _direct_kernel
        scratch = []
    kernel = functools.partial(kernel, inv_h=inv_h)

    # Scoped VMEM: double-buffered input (+mask) + output + scratch + margin.
    in_tile = tb * ts * th * itemsize
    mask_tile = tb * th * itemsize if masked else 0
    out_tile = tb * 2 * ts * itemsize
    scratch_bytes = (2 * tb * ts * 4) if tiled_h else 0
    need = 2 * (in_tile + mask_tile + out_tile) + scratch_bytes + (4 << 20)
    vmem_limit = int(min(max(need, 32 << 20), physical_vmem - (8 << 20)))
    if vmem_limit < need:
        vmem_limit = int(need)

    bytes_accessed = (B * S * H * itemsize + B * 2 * S * itemsize
                      + (B * H * itemsize if masked else 0))
    cost = pl.CostEstimate(
        flops=2 * B * S * H + (B * S * H if masked else 0),
        transcendentals=0,
        bytes_accessed=bytes_accessed,
    )

    out = pl.pallas_call(
        kernel,
        out_shape=jax.ShapeDtypeStruct((B, 2, S), dtype),
        grid_spec=pltpu.PrefetchScalarGridSpec(
            num_scalar_prefetch=0,
            grid=grid,
            in_specs=in_specs,
            out_specs=out_spec,
            scratch_shapes=scratch,
        ),
        compiler_params=pltpu.CompilerParams(
            dimension_semantics=("parallel", "parallel", "arbitrary"),
            vmem_limit_bytes=vmem_limit,
        ),
        cost_estimate=cost,
    )(*operands)

    # (B, 2, S) -> (B, 2*S): row-major contiguous, equivalent to
    # concat([max_pooled, avg_pooled], axis=1).
    return out.reshape(B, 2 * S)


def _reference(tensor, masks=None):
    # Pure-JAX reference mirroring the torch semantics.
    xm = tensor if masks is None else tensor * masks[:, None, :]
    return jnp.concatenate([jnp.max(xm, axis=2), jnp.mean(xm, axis=2)], axis=1)


if __name__ == "__main__":
    key = jax.random.PRNGKey(0)
    k1, k2, k3, k4 = jax.random.split(key, 4)

    # Shapes implied by the module: (n_batch, seq_len, hidden_dim).
    B, S, H = 2, 8, 32
    x = jax.random.normal(k1, (B, S, H), dtype=jnp.float32)
    masks = (jax.random.uniform(k2, (B, H)) > 0.3).astype(jnp.float32)

    # no-mask path (specialized kernel: no mask DMA, no multiply)
    out_nomask = jax.block_until_ready(avg_max_pooler(x))
    assert out_nomask.shape == (B, 2 * S)
    assert jnp.allclose(out_nomask, _reference(x), atol=1e-5, rtol=1e-5)

    # masked path
    out_mask = jax.block_until_ready(avg_max_pooler(x, masks))
    assert out_mask.shape == (B, 2 * S)
    assert jnp.allclose(out_mask, _reference(x, masks), atol=1e-5, rtol=1e-5)

    # Exercise the hidden-tiled (accumulating) path, seq tiling, and edge
    # padding (B % tb != 0) with forced small tiles; still a small problem.
    B2, S2, H2 = 5, 256, 256
    x2 = jax.random.normal(k3, (B2, S2, H2), dtype=jnp.float32)
    m2 = (jax.random.uniform(k4, (B2, H2)) > 0.5).astype(jnp.float32)

    out2 = jax.block_until_ready(avg_max_pooler(x2, _tiles=(2, 128, 128)))
    assert jnp.allclose(out2, _reference(x2), atol=1e-4, rtol=1e-4)

    out2m = jax.block_until_ready(avg_max_pooler(x2, m2, _tiles=(2, 128, 128)))
    assert jnp.allclose(out2m, _reference(x2, m2), atol=1e-4, rtol=1e-4)

    print("KERNEL_OK")
</pallas_src>

<mosaic_0001>
module attributes {stable_mosaic.version = 11 : i64} {
  func.func @_direct_kernel(%arg0: i32, %arg1: i32, %arg2: i32, %arg3: memref<1x8x32xf32, #tpu.memory_space<vmem>>, %arg4: memref<1x2x8xf32, #tpu.memory_space<vmem>>) attributes {dimension_semantics = [#tpu.dimension_semantics<parallel>, #tpu.dimension_semantics<parallel>, #tpu.dimension_semantics<arbitrary>], iteration_bounds = array<i64: 2, 1, 1>, scalar_prefetch = 0 : i64, scratch_operands = 0 : i64, tpu.core_type = #tpu.core_type<tc>, window_params = [{transform_indices = @transform_0, window_bounds = array<i64: 1, 8, 32>}, {transform_indices = @transform_1, window_bounds = array<i64: 1, 2, 8>}]} {
    %c0 = arith.constant 0 : index
    %c0_0 = arith.constant 0 : index
    %c0_1 = arith.constant 0 : index
    %0 = vector.load %arg3[%c0, %c0_0, %c0_1] : memref<1x8x32xf32, #tpu.memory_space<vmem>>, vector<1x8x32xf32>
    %cst = arith.constant dense<0xFF800000> : vector<1x8xf32>
    %1 = vector.multi_reduction <maximumf>, %0, %cst [2] : vector<1x8x32xf32> to vector<1x8xf32>
    %c0_2 = arith.constant 0 : index
    %c0_3 = arith.constant 0 : index
    %c0_4 = arith.constant 0 : index
    %2 = vector.load %arg4[%c0_2, %c0_3, %c0_4] : memref<1x2x8xf32, #tpu.memory_space<vmem>>, vector<1x1x8xf32>
    %3 = vector.shape_cast %2 : vector<1x1x8xf32> to vector<1x8xf32>
    %4 = vector.shape_cast %1 : vector<1x8xf32> to vector<1x1x8xf32>
    tpu.vector_store %arg4[%c0_2, %c0_3, %c0_4], %4 {strides = array<i32>} : memref<1x2x8xf32, #tpu.memory_space<vmem>>, vector<1x1x8xf32>,
    %cst_5 = arith.constant dense<0.000000e+00> : vector<1x8xf32>
    %5 = vector.multi_reduction <add>, %0, %cst_5 [2] : vector<1x8x32xf32> to vector<1x8xf32>
    %cst_6 = arith.constant 3.125000e-02 : f32
    %6 = vector.broadcast %cst_6 : f32 to vector<1x8xf32>
    %7 = arith.mulf %5, %6 : vector<1x8xf32>
    %c0_7 = arith.constant 0 : index
    %c1 = arith.constant 1 : index
    %c0_8 = arith.constant 0 : index
    %8 = vector.load %arg4[%c0_7, %c1, %c0_8] : memref<1x2x8xf32, #tpu.memory_space<vmem>>, vector<1x1x8xf32>
    %9 = vector.shape_cast %8 : vector<1x1x8xf32> to vector<1x8xf32>
    %10 = vector.shape_cast %7 : vector<1x8xf32> to vector<1x1x8xf32>
    tpu.vector_store %arg4[%c0_7, %c1, %c0_8], %10 {strides = array<i32>} : memref<1x2x8xf32, #tpu.memory_space<vmem>>, vector<1x1x8xf32>,
    return
  }
  func.func @transform_0(%arg0: i32, %arg1: i32, %arg2: i32) -> (i32, i32, i32) {
    %c0_i32 = arith.constant 0 : i32
    return %arg0, %arg1, %arg2 : i32, i32, i32
  }
  func.func @transform_1(%arg0: i32, %arg1: i32, %arg2: i32) -> (i32, i32, i32) {
    %c0_i32 = arith.constant 0 : i32
    %c0_i32_0 = arith.constant 0 : i32
    return %arg0, %c0_i32, %arg1 : i32, i32, i32
  }
}

</mosaic_0001>

<bundles_post_ra>
// kernel: tpu_custom_call.1
= control target key start
LH: loop header
LB: loop body
LE: loop exit
PB: predicated region body
PF: predicated region fallthrough
CT: control target
= control target key end

     0   :  { %6 = vsyncpa [#allocation3], 0  ;;  %s599_s0 = inlined_call_operand.hbm [shape: f32[2,8,32], index: 0, kind: input, shape index: {}]   ;;  %s600_s1 = inlined_call_operand.hbm [shape: f32[2,2,8], index: 1, kind: output, shape index: {}]  }
   0x1   :  { %8 = vsyncpa [#allocation3 + $0x1], 0 }
   0x2   :  { %9 = vsyncpa [#allocation4], 0 }
   0x3   :  { %11 = vsyncpa [#allocation4 + $0x1], 0  ;;  %s478_s6 = smov 0   ;;  %s480_s7 = smov 0  }
   0x4   :  { %s482_s8 = smov 0   ;;  %s484_s9 = smov 0  }
   0x5   :  { %s486_s10 = smov 0   ;;  %s488_s11 = smov 0  }
   0x6 LB: > { %s279_s12 = sadd.s32 4294967295, %s466_s11   ;;  %s280_s13 = sadd.s32 4294967294, %s466_s11   ;;  %s466_s11 = sphi %s488_s11, %s17_s11   ;;  %s462_s10 = sphi %s486_s10, %s609_s10   ;;  %s458_s9 = sphi %s484_s9, %s608_s9   ;;  %s454_s8 = sphi %s482_s8, %s607_s8   ;;  %s450_s7 = sphi %s480_s7, %s606_s7   ;;  %s446_s6 = sphi %s478_s6, %s605_s6  }
   0x7   : > { %s36_s14 = sadd.s32 1, %s462_s10  ;;  %s47_s15 = sadd.s32 1, %s454_s8 }
   0x8   : > { %p38_p0 = scmp.ge.s32.totalorder %s36_s14, 2  ;;  %p54_p1 = scmp.ne.s32.totalorder %s454_s8, %s450_s7 }
   0x9   : > { %p55_p2 = scmp.eq.s32.totalorder %s466_s11, 0  ;;  %p60_p3 = scmp.ne.s32.totalorder %s450_s7, %s446_s6 }
   0xa   : > { %s611_s14 = smov (%p38_p0, %s36_s14), 0  ;;  %p61_p5 = scmp.eq.s32.totalorder %s279_s12, 0 }
   0xb   : > { %p519_p4 = por %p55_p2, %p54_p1  ;;  %s40_s17 = ssub.s32 %s462_s10, %s611_s14 }
   0xc   : > { %p86_p6 = scmp.eq.s32.totalorder %s279_s12, 1  ;;  %p45_p7 = scmp.eq.s32.totalorder %s40_s17, 0 }
   0xd   : > { %p525_p8 = por %p61_p5, %p60_p3  ;;  %p92_p10 = scmp.eq.s32.totalorder %s280_s13, 1 }
   0xe   : > { %p529_p9 = por %p86_p6, %p54_p1  ;;  %p282_p12 = scmp.ge.s32.totalorder %s466_s11, 2 }
   0xf   : > { %s534_s20 = scalar_select %p45_p7, %s454_s8, %s47_s15  }
  0x10   : > { %p536_p11 = por %p92_p10, %p60_p3  ;;  %p304_p13 = scmp.lt.s32.totalorder %s466_s11, 2 }
  0x11   : > { %s112_s22 = sand.u32 1, %s454_s8   ;;  %s284_s24 = sshll.u32 %s462_s10, 3 }
  0x12   : > { %s283_s23 = sshll.u32 %s112_s22, 3  ;;  %s122_s27 = scalar_lea.hbm %s599_s0, %s284_s24 }
  0x13   : > { %s116_s28 = scalar_lea.vmem [#allocation2], %s283_s23  ;;  %s124_s30 = sshll.u32 %s122_s27, 4  ;;  %s125_s30 = int_to_ptr.hbm [resolvable:$true] %s124_s30 }
  0x14   : > { %s126_s29 = sshll.u32 %s116_s28, 4  ;;  %p297_p0 = pnand %p304_p13, %p519_p4  ;;  %s127_s29 = int_to_ptr.vmem [resolvable:$true] %s126_s29 }
  0x15   : > { %p285_p1 = scmp.ge.s32.totalorder %s466_s11, 1  ;;  %p131_p2 = scmp.lt.s32.totalorder %s466_s11, 3 }
  0x16   : > { %s113_s2 = scalar_lea.sflag [#allocation3], %s112_s22 }
  0x17   : > { %299 = dma.hbm_to_vmem [thread:$0]  (!%p297_p0), %s125_s30, 128, %s127_s29, %s113_s2  }
  0x18   : > { %p132_p3 = pnand %p285_p1, %p131_p2 }
  0x19   : > { %s552_s3 = sand.u32 (!%p132_p3), 1, %s450_s7  }
  0x1a   : > { %135 = sbr.rel (%p132_p3) target bundleno = 163 (0xa3), region = 24  ;;  %s286_s4 = sshll.u32 (!%p132_p3), %s552_s3, 3 }
  0x1b   : > { %s138_s5 = scalar_lea.sflag (!%p132_p3), [#allocation3], %s552_s3  ;;  %s141_s12 = scalar_lea.vmem (!%p132_p3), [#allocation2], %s286_s4 }
  0x1f   : > { %437 = dma.done.wait (%p525_p8), %s138_s5, 128  }
  0x20   : > { %439 = vsyncadd (%p525_p8), %s138_s5, 4294967168  ;;  %vm162_vm0 = vcmask 261120   ;;  %v161_v0 = vld [vmem:[%s141_s12] sm:$0xff]  ;;  %v167_v3 = vlaneseq  ;;  %s287_s13 = sshll.u32 %s552_s3, 1  ;;  %s289_s15 = sshll.u32 %s458_s9, 1  ;;  %vm171_vm1 = vcmask 57344  }
  0x21   : > { %v173_v1 = vsel %vm162_vm0, %v161_v0, 0.0  ;;  %v163_v2 = vsel %vm162_vm0, %v161_v0, -inf  ;;  %s193_s18 = scalar_lea.hbm %s600_s1, %s289_s15  ;;  %s160_s22 = scalar_lea.vmem [#allocation5], %s287_s13 }
  0x22   : > { %174 = vadd.xlane.f32.xlu0 %v173_v1  ;;  %v168_v4 = vand.u32 127, %v167_v3  ;;  %s195_s23 = sshll.u32 %s160_s22, 4  ;;  %s197_s24 = sshll.u32 %s193_s18, 4  ;;  %s196_s23 = int_to_ptr.vmem [resolvable:$true] %s195_s23  ;;  %s198_s24 = int_to_ptr.hbm [resolvable:$true] %s197_s24 }
  0x23   : > { %s182_s25 = scalar_lea.sflag [#allocation4], %s552_s3  ;;  %s398_s26 = sshra.s32 %s198_s24, 4  ;;  %s399_s26 = int_to_ptr.hbm [resolvable:$true] %s398_s26 }
  0x24   : > { %s400_s9 = scalar_lea.hbm %s399_s26, 2  ;;  %s404_s29 = scalar_lea.hbm %s600_s1, 4 }
  0x25   : > { %p401_p4 = scmp.ne.s32.totalorder %s399_s26, %s400_s9  ;;  %p405_p7 = scmp.lt.s32.totalorder %s399_s26, %s600_s1 }
  0x26   : > { %p406_p8 = scmp.lt.s32.totalorder %s404_s29, %s400_s9 }
  0x27   : > { %p402_p5 = pnand %p401_p4, %p529_p9 }
  0x28   : > { %p407_p10 = por %p406_p8, %p405_p7 }
  0x29   : > { %p403_p6 = pneg %p402_p5 }
  0x2a   : > { %164 = vmax.xlane.f32.xlu0 %v163_v2 }
  0x2b   : > { %p408_p13 = pnand %p407_p10, %p403_p6 }
  0x95   : > { %v175_v5 = vpop.xlane.xlu0 %174 }
  0x96   : > { %v176_v6 = vmul.f32 0.03125, %v175_v5 }
  0x98   : > { %v178_v7 = vperm.slane %v176_v6, %v168_v4 }
  0x9a   : > { %180 = vst.msk [vmem:[%s160_s22 + $0x1] sm:$0x1] %vm171_vm1, %v178_v7 }
  0x9d   : > { %v165_v8 = vpop.xlane.xlu0 %164 }
  0x9e   : > { %v169_v9 = vperm.slane %v165_v8, %v168_v4 }
  0xa0   : > { %172 = vst.msk [vmem:[%s160_s22] sm:$0x1] %vm171_vm1, %v169_v9 }
  0xa1   : > { %411 = shalt.err (!%p408_p13)
}
  0xa2   : > { %294 = dma.vmem_to_hbm [thread:$0]  (%p529_p9), %s196_s23, 32, %s198_s24, %s182_s25  }
  0xa3 PF: > { %s209_s3 = sand.u32 1, %s446_s6   ;;  %p301_p0 = pnand %p282_p12, %p536_p11 }
  0xa4   : > { %s210_s4 = scalar_lea.sflag [#allocation4], %s209_s3 }
  0xa5   : > { %p302_p1 = pneg %p301_p0 }
  0xa7   : > { %441 = dma.done.wait (%p302_p1), %s210_s4, 32  }
  0xa8   : > { %443 = vsyncadd (%p302_p1), %s210_s4, 4294967264  ;;  %s17_s11 = sadd.s32 1, %s466_s11   ;;  %s605_s6 = smov %s450_s7 }
  0xa9   : > { %p14_p2 = scmp.ge.s32.totalorder %s17_s11, 4   ;;  %s606_s7 = smov %s454_s8 }
  0xaa   : > { %s607_s8 = smov %s534_s20  ;;  %s608_s9 = smov %s462_s10 }
  0xab   : > { %s609_s10 = smov %s611_s14  ;;  %16 = sbr.rel (!%p14_p2) target bundleno = 6 (0x6), region = 69 }
  0xb0   :  { %216 = vsyncpa [#allocation3], 1 }
  0xb1   :  { %218 = vsyncpa [#allocation3 + $0x1], 1 }
  0xb2   :  { %219 = vsyncpa [#allocation4], 1 }
  0xb3   :  { %221 = vsyncpa [#allocation4 + $0x1], 1 }

</bundles_post_ra>
